<compile_context>
chip_gen: v5e
topology: v5e:2x2
jax: 0.10.0
libtpu: 0.0.40
codegen_flags: <defaults>
</compile_context>

<pallas_src>
import functools

import jax
import jax.numpy as jnp
from jax.experimental import pallas as pl
from jax.experimental.pallas import tpu as pltpu


# ----------------------------------------------------------------------------
# Pallas kernel: whole-sequence LSTM recurrence, single invocation (no grid).
#   x_ref    : (T, B, H)   embedded inputs (time-major)
#   h0/c0    : (B, H)      initial state
#   wih_t    : (H, 4H)     W_ih^T with g-columns pre-scaled by 2
#   whh_t    : (H, 4H)     W_hh^T with g-columns pre-scaled by 2
#   b_ref    : (1, 4H)     b_ih + b_hh with g-segment pre-scaled by 2
#   out_ref  : (B, T, H)   per-step hidden states (batch-major, no transpose)
#   hN/cN    : (B, H)      final state
# ----------------------------------------------------------------------------
def _decoder_lstm_kernel(x_ref, h0_ref, c0_ref, wih_t_ref, whh_t_ref, b_ref,
                         out_ref, hN_ref, cN_ref, *, hidden_size, seq_len):
    H = hidden_size
    wih_t = wih_t_ref[...]                       # (H, 4H), resident
    whh_t = whh_t_ref[...]                       # (H, 4H), resident
    bias = b_ref[...]                            # (1, 4H)

    h = h0_ref[...]                              # (B, H) register carry
    c = c0_ref[...]

    # Static full unroll: T is small here.  The x_t projection has no dependence
    # on h, so the scheduler can hoist/overlap it off the serial h->h path.
    # For long sequences switch to lax.fori_loop(..., unroll=4/8) + time tiling.
    for t in range(seq_len):
        x_t = x_ref[t]                           # (B, H)
        gates = (jnp.dot(x_t, wih_t, preferred_element_type=jnp.float32)
                 + bias
                 + jnp.dot(h, whh_t, preferred_element_type=jnp.float32))

        # Single EUP pass over the whole (B, 4H) register.  g-columns were
        # pre-scaled by 2, so 2*sigmoid(2g)-1 == tanh(g).
        sig = jax.nn.sigmoid(gates)
        i_g = sig[:, 0 * H:1 * H]
        f_g = sig[:, 1 * H:2 * H]
        g_g = 2.0 * sig[:, 2 * H:3 * H] - 1.0    # tanh of the raw g pre-activation
        o_g = sig[:, 3 * H:4 * H]

        c = f_g * c + i_g * g_g
        h = o_g * jnp.tanh(c)

        out_ref[:, t, :] = h.astype(out_ref.dtype)   # (B, H) slab at time t

    hN_ref[...] = h.astype(hN_ref.dtype)
    cN_ref[...] = c.astype(cN_ref.dtype)


def lstm_pallas(x_tbh, h0, c0, w_ih, w_hh, b_ih, b_hh):
    """x_tbh: (T, B, H); h0/c0: (B, H); returns (out (B,T,H), hN, cN)."""
    T, B, H = x_tbh.shape
    f32 = jnp.float32

    # Pre-scale the g-gate columns by 2 so the kernel needs only one sigmoid
    # pass (tanh(x) = 2*sigmoid(2x) - 1).  Done once in the wrapper, free.
    gate_scale = jnp.ones((4 * H,), f32).at[2 * H:3 * H].set(2.0)
    wih_t = w_ih.astype(f32).T * gate_scale[None, :]          # (H, 4H)
    whh_t = w_hh.astype(f32).T * gate_scale[None, :]          # (H, 4H)
    bias = ((b_ih + b_hh).astype(f32) * gate_scale)[None, :]  # (1, 4H)

    # Whole-sequence-resident design: everything lives in VMEM exactly once
    # (no grid => no double-buffered pipeline copies).  Guard the footprint;
    # for larger T*B*H, time-tile the sequence with a grid over T-chunks and
    # carry h/c in VMEM scratch (v7x scoped VMEM is only 32 MiB).
    vmem_bytes = 4 * (2 * T * B * H + 4 * B * H + 2 * H * 4 * H + 4 * H)
    assert vmem_bytes < 16 * 1024 * 1024, "time-tile the sequence for this size"

    kernel = functools.partial(_decoder_lstm_kernel, hidden_size=H, seq_len=T)
    vmem_spec = pl.BlockSpec(memory_space=pltpu.MemorySpace.VMEM)

    out, h_n, c_n = pl.pallas_call(
        kernel,
        out_shape=(
            jax.ShapeDtypeStruct((B, T, H), f32),   # batch-major: no transpose
            jax.ShapeDtypeStruct((B, H), f32),
            jax.ShapeDtypeStruct((B, H), f32),
        ),
        in_specs=[vmem_spec] * 6,
        out_specs=(vmem_spec, vmem_spec, vmem_spec),
    )(x_tbh.astype(f32), h0.astype(f32), c0.astype(f32), wih_t, whh_t, bias)
    return out, h_n, c_n


# ----------------------------------------------------------------------------
# Glue mirroring the PyTorch module
# ----------------------------------------------------------------------------
def reshape_state(state):
    h_state, c_state = state
    new_h = jnp.concatenate([h_state[:-1], h_state[1:]], axis=2)
    new_c = jnp.concatenate([c_state[:-1], c_state[1:]], axis=2)
    return (new_h, new_c)


def decoder_forward(params, tgt, dec_state, encoder_outputs, src_lengths):
    """Mirrors Decoder.forward with attn=None (inference: dropout is identity)."""
    del encoder_outputs, src_lengths   # attn=None path only

    if dec_state[0].shape[0] == 2:
        dec_state = reshape_state(dec_state)

    if tgt.shape[1] > 1:
        tgt = tgt[:, :-1]

    # Gather directly in (T, B) order -> (T, B, H): no f32 transpose HLO.
    x_tbh = params["embedding"][tgt.T]
    # dropout: identity in eval/inference mode.

    h0 = dec_state[0][0]                         # (B, H)  (num_layers == 1)
    c0 = dec_state[1][0]

    outputs, h_n, c_n = lstm_pallas(
        x_tbh, h0, c0,
        params["w_ih"], params["w_hh"], params["b_ih"], params["b_hh"])

    # outputs already (B, T, H) == torch.cat(outputs, dim=1)
    new_state = (h_n[None, :, :], c_n[None, :, :])
    return outputs, new_state


# ----------------------------------------------------------------------------
# Pure-JAX reference (for correctness check)
# ----------------------------------------------------------------------------
def lstm_reference(x_tbh, h0, c0, w_ih, w_hh, b_ih, b_hh):
    H = h0.shape[-1]

    def step(carry, x):
        h, c = carry
        gates = x @ w_ih.T + h @ w_hh.T + b_ih + b_hh
        i = jax.nn.sigmoid(gates[:, 0 * H:1 * H])
        f = jax.nn.sigmoid(gates[:, 1 * H:2 * H])
        g = jnp.tanh(gates[:, 2 * H:3 * H])
        o = jax.nn.sigmoid(gates[:, 3 * H:4 * H])
        c_new = f * c + i * g
        h_new = o * jnp.tanh(c_new)
        return (h_new, c_new), h_new

    (h_n, c_n), outs = jax.lax.scan(step, (h0, c0), x_tbh)
    return outs, h_n, c_n


# ----------------------------------------------------------------------------
# Main
# ----------------------------------------------------------------------------
if __name__ == "__main__":
    key = jax.random.PRNGKey(0)
    ks = jax.random.split(key, 8)

    hidden_size = 32
    tgt_vocab_size = 11
    padding_idx = 0
    batch = 2
    tgt_len = 8          # forward drops the last token -> T = 7
    src_len = 5
    enc_hidden = hidden_size // 2   # dec_state arrives as 2 layers of H/2 -> reshape_state

    scale = 0.1
    params = {
        "embedding": (scale * jax.random.normal(
            ks[0], (tgt_vocab_size, hidden_size), jnp.float32)
        ).at[padding_idx].set(0.0),
        "w_ih": scale * jax.random.normal(ks[1], (4 * hidden_size, hidden_size), jnp.float32),
        "w_hh": scale * jax.random.normal(ks[2], (4 * hidden_size, hidden_size), jnp.float32),
        "b_ih": scale * jax.random.normal(ks[3], (4 * hidden_size,), jnp.float32),
        "b_hh": scale * jax.random.normal(ks[4], (4 * hidden_size,), jnp.float32),
    }

    tgt = jax.random.randint(ks[5], (batch, tgt_len), 0, tgt_vocab_size, jnp.int32)
    h_state = scale * jax.random.normal(ks[6], (2, batch, enc_hidden), jnp.float32)
    c_state = scale * jax.random.normal(ks[7], (2, batch, enc_hidden), jnp.float32)
    dec_state = (h_state, c_state)
    encoder_outputs = jnp.zeros((batch, src_len, hidden_size), jnp.float32)  # unused (attn=None)
    src_lengths = jnp.full((batch,), src_len, jnp.int32)                      # unused (attn=None)

    outputs, new_state = decoder_forward(params, tgt, dec_state,
                                         encoder_outputs, src_lengths)
    outputs = jax.block_until_ready(outputs)
    new_state = jax.tree_util.tree_map(jax.block_until_ready, new_state)

    # Reference check against a pure-JAX scan LSTM.
    ds = reshape_state(dec_state)
    emb = params["embedding"][tgt[:, :-1]]
    ref_out, ref_h, ref_c = lstm_reference(
        jnp.transpose(emb, (1, 0, 2)), ds[0][0], ds[1][0],
        params["w_ih"], params["w_hh"], params["b_ih"], params["b_hh"])
    ref_out = jnp.transpose(ref_out, (1, 0, 2))

    assert outputs.shape == (batch, tgt_len - 1, hidden_size)
    assert new_state[0].shape == (1, batch, hidden_size)
    # tanh is computed as 2*sigmoid(2x)-1 in-kernel -> tiny (~1e-7/step) deviation.
    assert jnp.allclose(outputs, ref_out, atol=1e-4, rtol=1e-4)
    assert jnp.allclose(new_state[0][0], ref_h, atol=1e-4, rtol=1e-4)
    assert jnp.allclose(new_state[1][0], ref_c, atol=1e-4, rtol=1e-4)

    print("KERNEL_OK")
</pallas_src>

<mosaic_0001>
module attributes {stable_mosaic.version = 11 : i64} {
  func.func @_decoder_lstm_kernel(%arg0: memref<7x2x32xf32, #tpu.memory_space<vmem>>, %arg1: memref<2x32xf32, #tpu.memory_space<vmem>>, %arg2: memref<2x32xf32, #tpu.memory_space<vmem>>, %arg3: memref<32x128xf32, #tpu.memory_space<vmem>>, %arg4: memref<32x128xf32, #tpu.memory_space<vmem>>, %arg5: memref<1x128xf32, #tpu.memory_space<vmem>>, %arg6: memref<2x7x32xf32, #tpu.memory_space<vmem>>, %arg7: memref<2x32xf32, #tpu.memory_space<vmem>>, %arg8: memref<2x32xf32, #tpu.memory_space<vmem>>) attributes {dimension_semantics = [], scalar_prefetch = 0 : i64, scratch_operands = 0 : i64, tpu.core_type = #tpu.core_type<tc>} {
    %c0 = arith.constant 0 : index
    %c0_0 = arith.constant 0 : index
    %0 = vector.load %arg3[%c0, %c0_0] : memref<32x128xf32, #tpu.memory_space<vmem>>, vector<32x128xf32>
    %c0_1 = arith.constant 0 : index
    %c0_2 = arith.constant 0 : index
    %1 = vector.load %arg4[%c0_1, %c0_2] : memref<32x128xf32, #tpu.memory_space<vmem>>, vector<32x128xf32>
    %c0_3 = arith.constant 0 : index
    %c0_4 = arith.constant 0 : index
    %2 = vector.load %arg5[%c0_3, %c0_4] : memref<1x128xf32, #tpu.memory_space<vmem>>, vector<1x128xf32>
    %c0_5 = arith.constant 0 : index
    %c0_6 = arith.constant 0 : index
    %3 = vector.load %arg1[%c0_5, %c0_6] : memref<2x32xf32, #tpu.memory_space<vmem>>, vector<2x32xf32>
    %c0_7 = arith.constant 0 : index
    %c0_8 = arith.constant 0 : index
    %4 = vector.load %arg2[%c0_7, %c0_8] : memref<2x32xf32, #tpu.memory_space<vmem>>, vector<2x32xf32>
    %c0_9 = arith.constant 0 : index
    %c0_10 = arith.constant 0 : index
    %c0_11 = arith.constant 0 : index
    %5 = vector.load %arg0[%c0_9, %c0_10, %c0_11] : memref<7x2x32xf32, #tpu.memory_space<vmem>>, vector<1x2x32xf32>
    %6 = vector.shape_cast %5 : vector<1x2x32xf32> to vector<2x32xf32>
    %cst = arith.constant dense<0.000000e+00> : vector<2x128xf32>
    %7 = tpu.matmul %6, %0, %cst {dimension_numbers = #tpu.dot_dimension_numbers<[1], [0], [0], [1], [0, 0, 1, 1], [], []>} : vector<2x32xf32>, vector<32x128xf32>, vector<2x128xf32> -> vector<2x128xf32>
    %8 = vector.broadcast %2 : vector<1x128xf32> to vector<2x128xf32>
    %9 = arith.addf %7, %8 : vector<2x128xf32>
    %cst_12 = arith.constant dense<0.000000e+00> : vector<2x128xf32>
    %10 = tpu.matmul %3, %1, %cst_12 {dimension_numbers = #tpu.dot_dimension_numbers<[1], [0], [0], [1], [0, 0, 1, 1], [], []>} : vector<2x32xf32>, vector<32x128xf32>, vector<2x128xf32> -> vector<2x128xf32>
    %11 = arith.addf %9, %10 : vector<2x128xf32>
    %12 = arith.negf %11 : vector<2x128xf32>
    %13 = math.exp %12 : vector<2x128xf32>
    %cst_13 = arith.constant 1.000000e+00 : f32
    %14 = vector.broadcast %cst_13 : f32 to vector<2x128xf32>
    %15 = arith.addf %14, %13 : vector<2x128xf32>
    %16 = arith.divf %14, %15 : vector<2x128xf32>
    %17 = vector.extract_strided_slice %16 {offsets = [0, 0], sizes = [2, 32], strides = [1, 1]} : vector<2x128xf32> to vector<2x32xf32>
    %18 = vector.extract_strided_slice %16 {offsets = [0, 32], sizes = [2, 32], strides = [1, 1]} : vector<2x128xf32> to vector<2x32xf32>
    %19 = vector.extract_strided_slice %16 {offsets = [0, 64], sizes = [2, 32], strides = [1, 1]} : vector<2x128xf32> to vector<2x32xf32>
    %cst_14 = arith.constant 2.000000e+00 : f32
    %20 = vector.broadcast %cst_14 : f32 to vector<2x32xf32>
    %21 = arith.mulf %20, %19 : vector<2x32xf32>
    %cst_15 = arith.constant 1.000000e+00 : f32
    %22 = vector.broadcast %cst_15 : f32 to vector<2x32xf32>
    %23 = arith.subf %21, %22 : vector<2x32xf32>
    %24 = vector.extract_strided_slice %16 {offsets = [0, 96], sizes = [2, 32], strides = [1, 1]} : vector<2x128xf32> to vector<2x32xf32>
    %25 = arith.mulf %18, %4 : vector<2x32xf32>
    %26 = arith.mulf %17, %23 : vector<2x32xf32>
    %27 = arith.addf %25, %26 : vector<2x32xf32>
    %28 = math.tanh %27 : vector<2x32xf32>
    %29 = arith.mulf %24, %28 : vector<2x32xf32>
    %c0_16 = arith.constant 0 : index
    %c0_17 = arith.constant 0 : index
    %c0_18 = arith.constant 0 : index
    %30 = vector.load %arg6[%c0_16, %c0_17, %c0_18] : memref<2x7x32xf32, #tpu.memory_space<vmem>>, vector<2x1x32xf32>
    %31 = vector.shape_cast %30 : vector<2x1x32xf32> to vector<2x32xf32>
    %32 = vector.shape_cast %29 : vector<2x32xf32> to vector<2x1x32xf32>
    tpu.vector_store %arg6[%c0_16, %c0_17, %c0_18], %32 {strides = array<i32>} : memref<2x7x32xf32, #tpu.memory_space<vmem>>, vector<2x1x32xf32>,
    %c1 = arith.constant 1 : index
    %c0_19 = arith.constant 0 : index
    %c0_20 = arith.constant 0 : index
    %33 = vector.load %arg0[%c1, %c0_19, %c0_20] : memref<7x2x32xf32, #tpu.memory_space<vmem>>, vector<1x2x32xf32>
    %34 = vector.shape_cast %33 : vector<1x2x32xf32> to vector<2x32xf32>
    %cst_21 = arith.constant dense<0.000000e+00> : vector<2x128xf32>
    %35 = tpu.matmul %34, %0, %cst_21 {dimension_numbers = #tpu.dot_dimension_numbers<[1], [0], [0], [1], [0, 0, 1, 1], [], []>} : vector<2x32xf32>, vector<32x128xf32>, vector<2x128xf32> -> vector<2x128xf32>
    %36 = vector.broadcast %2 : vector<1x128xf32> to vector<2x128xf32>
    %37 = arith.addf %35, %36 : vector<2x128xf32>
    %cst_22 = arith.constant dense<0.000000e+00> : vector<2x128xf32>
    %38 = tpu.matmul %29, %1, %cst_22 {dimension_numbers = #tpu.dot_dimension_numbers<[1], [0], [0], [1], [0, 0, 1, 1], [], []>} : vector<2x32xf32>, vector<32x128xf32>, vector<2x128xf32> -> vector<2x128xf32>
    %39 = arith.addf %37, %38 : vector<2x128xf32>
    %40 = arith.negf %39 : vector<2x128xf32>
    %41 = math.exp %40 : vector<2x128xf32>
    %cst_23 = arith.constant 1.000000e+00 : f32
    %42 = vector.broadcast %cst_23 : f32 to vector<2x128xf32>
    %43 = arith.addf %42, %41 : vector<2x128xf32>
    %44 = arith.divf %42, %43 : vector<2x128xf32>
    %45 = vector.extract_strided_slice %44 {offsets = [0, 0], sizes = [2, 32], strides = [1, 1]} : vector<2x128xf32> to vector<2x32xf32>
    %46 = vector.extract_strided_slice %44 {offsets = [0, 32], sizes = [2, 32], strides = [1, 1]} : vector<2x128xf32> to vector<2x32xf32>
    %47 = vector.extract_strided_slice %44 {offsets = [0, 64], sizes = [2, 32], strides = [1, 1]} : vector<2x128xf32> to vector<2x32xf32>
    %cst_24 = arith.constant 2.000000e+00 : f32
    %48 = vector.broadcast %cst_24 : f32 to vector<2x32xf32>
    %49 = arith.mulf %48, %47 : vector<2x32xf32>
    %cst_25 = arith.constant 1.000000e+00 : f32
    %50 = vector.broadcast %cst_25 : f32 to vector<2x32xf32>
    %51 = arith.subf %49, %50 : vector<2x32xf32>
    %52 = vector.extract_strided_slice %44 {offsets = [0, 96], sizes = [2, 32], strides = [1, 1]} : vector<2x128xf32> to vector<2x32xf32>
    %53 = arith.mulf %46, %27 : vector<2x32xf32>
    %54 = arith.mulf %45, %51 : vector<2x32xf32>
    %55 = arith.addf %53, %54 : vector<2x32xf32>
    %56 = math.tanh %55 : vector<2x32xf32>
    %57 = arith.mulf %52, %56 : vector<2x32xf32>
    %c0_26 = arith.constant 0 : index
    %c1_27 = arith.constant 1 : index
    %c0_28 = arith.constant 0 : index
    %58 = vector.load %arg6[%c0_26, %c1_27, %c0_28] : memref<2x7x32xf32, #tpu.memory_space<vmem>>, vector<2x1x32xf32>
    %59 = vector.shape_cast %58 : vector<2x1x32xf32> to vector<2x32xf32>
    %60 = vector.shape_cast %57 : vector<2x32xf32> to vector<2x1x32xf32>
    tpu.vector_store %arg6[%c0_26, %c1_27, %c0_28], %60 {strides = array<i32>} : memref<2x7x32xf32, #tpu.memory_space<vmem>>, vector<2x1x32xf32>,
    %c2 = arith.constant 2 : index
    %c0_29 = arith.constant 0 : index
    %c0_30 = arith.constant 0 : index
    %61 = vector.load %arg0[%c2, %c0_29, %c0_30] : memref<7x2x32xf32, #tpu.memory_space<vmem>>, vector<1x2x32xf32>
    %62 = vector.shape_cast %61 : vector<1x2x32xf32> to vector<2x32xf32>
    %cst_31 = arith.constant dense<0.000000e+00> : vector<2x128xf32>
    %63 = tpu.matmul %62, %0, %cst_31 {dimension_numbers = #tpu.dot_dimension_numbers<[1], [0], [0], [1], [0, 0, 1, 1], [], []>} : vector<2x32xf32>, vector<32x128xf32>, vector<2x128xf32> -> vector<2x128xf32>
    %64 = vector.broadcast %2 : vector<1x128xf32> to vector<2x128xf32>
    %65 = arith.addf %63, %64 : vector<2x128xf32>
    %cst_32 = arith.constant dense<0.000000e+00> : vector<2x128xf32>
    %66 = tpu.matmul %57, %1, %cst_32 {dimension_numbers = #tpu.dot_dimension_numbers<[1], [0], [0], [1], [0, 0, 1, 1], [], []>} : vector<2x32xf32>, vector<32x128xf32>, vector<2x128xf32> -> vector<2x128xf32>
    %67 = arith.addf %65, %66 : vector<2x128xf32>
    %68 = arith.negf %67 : vector<2x128xf32>
    %69 = math.exp %68 : vector<2x128xf32>
    %cst_33 = arith.constant 1.000000e+00 : f32
    %70 = vector.broadcast %cst_33 : f32 to vector<2x128xf32>
    %71 = arith.addf %70, %69 : vector<2x128xf32>
    %72 = arith.divf %70, %71 : vector<2x128xf32>
    %73 = vector.extract_strided_slice %72 {offsets = [0, 0], sizes = [2, 32], strides = [1, 1]} : vector<2x128xf32> to vector<2x32xf32>
    %74 = vector.extract_strided_slice %72 {offsets = [0, 32], sizes = [2, 32], strides = [1, 1]} : vector<2x128xf32> to vector<2x32xf32>
    %75 = vector.extract_strided_slice %72 {offsets = [0, 64], sizes = [2, 32], strides = [1, 1]} : vector<2x128xf32> to vector<2x32xf32>
    %cst_34 = arith.constant 2.000000e+00 : f32
    %76 = vector.broadcast %cst_34 : f32 to vector<2x32xf32>
    %77 = arith.mulf %76, %75 : vector<2x32xf32>
    %cst_35 = arith.constant 1.000000e+00 : f32
    %78 = vector.broadcast %cst_35 : f32 to vector<2x32xf32>
    %79 = arith.subf %77, %78 : vector<2x32xf32>
    %80 = vector.extract_strided_slice %72 {offsets = [0, 96], sizes = [2, 32], strides = [1, 1]} : vector<2x128xf32> to vector<2x32xf32>
    %81 = arith.mulf %74, %55 : vector<2x32xf32>
    %82 = arith.mulf %73, %79 : vector<2x32xf32>
    %83 = arith.addf %81, %82 : vector<2x32xf32>
    %84 = math.tanh %83 : vector<2x32xf32>
    %85 = arith.mulf %80, %84 : vector<2x32xf32>
    %c0_36 = arith.constant 0 : index
    %c2_37 = arith.constant 2 : index
    %c0_38 = arith.constant 0 : index
    %86 = vector.load %arg6[%c0_36, %c2_37, %c0_38] : memref<2x7x32xf32, #tpu.memory_space<vmem>>, vector<2x1x32xf32>
    %87 = vector.shape_cast %86 : vector<2x1x32xf32> to vector<2x32xf32>
    %88 = vector.shape_cast %85 : vector<2x32xf32> to vector<2x1x32xf32>
    tpu.vector_store %arg6[%c0_36, %c2_37, %c0_38], %88 {strides = array<i32>} : memref<2x7x32xf32, #tpu.memory_space<vmem>>, vector<2x1x32xf32>,
    %c3 = arith.constant 3 : index
    %c0_39 = arith.constant 0 : index
    %c0_40 = arith.constant 0 : index
    %89 = vector.load %arg0[%c3, %c0_39, %c0_40] : memref<7x2x32xf32, #tpu.memory_space<vmem>>, vector<1x2x32xf32>
    %90 = vector.shape_cast %89 : vector<1x2x32xf32> to vector<2x32xf32>
    %cst_41 = arith.constant dense<0.000000e+00> : vector<2x128xf32>
    %91 = tpu.matmul %90, %0, %cst_41 {dimension_numbers = #tpu.dot_dimension_numbers<[1], [0], [0], [1], [0, 0, 1, 1], [], []>} : vector<2x32xf32>, vector<32x128xf32>, vector<2x128xf32> -> vector<2x128xf32>
    %92 = vector.broadcast %2 : vector<1x128xf32> to vector<2x128xf32>
    %93 = arith.addf %91, %92 : vector<2x128xf32>
    %cst_42 = arith.constant dense<0.000000e+00> : vector<2x128xf32>
    %94 = tpu.matmul %85, %1, %cst_42 {dimension_numbers = #tpu.dot_dimension_numbers<[1], [0], [0], [1], [0, 0, 1, 1], [], []>} : vector<2x32xf32>, vector<32x128xf32>, vector<2x128xf32> -> vector<2x128xf32>
    %95 = arith.addf %93, %94 : vector<2x128xf32>
    %96 = arith.negf %95 : vector<2x128xf32>
    %97 = math.exp %96 : vector<2x128xf32>
    %cst_43 = arith.constant 1.000000e+00 : f32
    %98 = vector.broadcast %cst_43 : f32 to vector<2x128xf32>
    %99 = arith.addf %98, %97 : vector<2x128xf32>
    %100 = arith.divf %98, %99 : vector<2x128xf32>
    %101 = vector.extract_strided_slice %100 {offsets = [0, 0], sizes = [2, 32], strides = [1, 1]} : vector<2x128xf32> to vector<2x32xf32>
    %102 = vector.extract_strided_slice %100 {offsets = [0, 32], sizes = [2, 32], strides = [1, 1]} : vector<2x128xf32> to vector<2x32xf32>
    %103 = vector.extract_strided_slice %100 {offsets = [0, 64], sizes = [2, 32], strides = [1, 1]} : vector<2x128xf32> to vector<2x32xf32>
    %cst_44 = arith.constant 2.000000e+00 : f32
    %104 = vector.broadcast %cst_44 : f32 to vector<2x32xf32>
    %105 = arith.mulf %104, %103 : vector<2x32xf32>
    %cst_45 = arith.constant 1.000000e+00 : f32
    %106 = vector.broadcast %cst_45 : f32 to vector<2x32xf32>
    %107 = arith.subf %105, %106 : vector<2x32xf32>
    %108 = vector.extract_strided_slice %100 {offsets = [0, 96], sizes = [2, 32], strides = [1, 1]} : vector<2x128xf32> to vector<2x32xf32>
    %109 = arith.mulf %102, %83 : vector<2x32xf32>
    %110 = arith.mulf %101, %107 : vector<2x32xf32>
    %111 = arith.addf %109, %110 : vector<2x32xf32>
    %112 = math.tanh %111 : vector<2x32xf32>
    %113 = arith.mulf %108, %112 : vector<2x32xf32>
    %c0_46 = arith.constant 0 : index
    %c3_47 = arith.constant 3 : index
    %c0_48 = arith.constant 0 : index
    %114 = vector.load %arg6[%c0_46, %c3_47, %c0_48] : memref<2x7x32xf32, #tpu.memory_space<vmem>>, vector<2x1x32xf32>
    %115 = vector.shape_cast %114 : vector<2x1x32xf32> to vector<2x32xf32>
    %116 = vector.shape_cast %113 : vector<2x32xf32> to vector<2x1x32xf32>
    tpu.vector_store %arg6[%c0_46, %c3_47, %c0_48], %116 {strides = array<i32>} : memref<2x7x32xf32, #tpu.memory_space<vmem>>, vector<2x1x32xf32>,
    %c4 = arith.constant 4 : index
    %c0_49 = arith.constant 0 : index
    %c0_50 = arith.constant 0 : index
    %117 = vector.load %arg0[%c4, %c0_49, %c0_50] : memref<7x2x32xf32, #tpu.memory_space<vmem>>, vector<1x2x32xf32>
    %118 = vector.shape_cast %117 : vector<1x2x32xf32> to vector<2x32xf32>
    %cst_51 = arith.constant dense<0.000000e+00> : vector<2x128xf32>
    %119 = tpu.matmul %118, %0, %cst_51 {dimension_numbers = #tpu.dot_dimension_numbers<[1], [0], [0], [1], [0, 0, 1, 1], [], []>} : vector<2x32xf32>, vector<32x128xf32>, vector<2x128xf32> -> vector<2x128xf32>
    %120 = vector.broadcast %2 : vector<1x128xf32> to vector<2x128xf32>
    %121 = arith.addf %119, %120 : vector<2x128xf32>
    %cst_52 = arith.constant dense<0.000000e+00> : vector<2x128xf32>
    %122 = tpu.matmul %113, %1, %cst_52 {dimension_numbers = #tpu.dot_dimension_numbers<[1], [0], [0], [1], [0, 0, 1, 1], [], []>} : vector<2x32xf32>, vector<32x128xf32>, vector<2x128xf32> -> vector<2x128xf32>
    %123 = arith.addf %121, %122 : vector<2x128xf32>
    %124 = arith.negf %123 : vector<2x128xf32>
    %125 = math.exp %124 : vector<2x128xf32>
    %cst_53 = arith.constant 1.000000e+00 : f32
    %126 = vector.broadcast %cst_53 : f32 to vector<2x128xf32>
    %127 = arith.addf %126, %125 : vector<2x128xf32>
    %128 = arith.divf %126, %127 : vector<2x128xf32>
    %129 = vector.extract_strided_slice %128 {offsets = [0, 0], sizes = [2, 32], strides = [1, 1]} : vector<2x128xf32> to vector<2x32xf32>
    %130 = vector.extract_strided_slice %128 {offsets = [0, 32], sizes = [2, 32], strides = [1, 1]} : vector<2x128xf32> to vector<2x32xf32>
    %131 = vector.extract_strided_slice %128 {offsets = [0, 64], sizes = [2, 32], strides = [1, 1]} : vector<2x128xf32> to vector<2x32xf32>
    %cst_54 = arith.constant 2.000000e+00 : f32
    %132 = vector.broadcast %cst_54 : f32 to vector<2x32xf32>
    %133 = arith.mulf %132, %131 : vector<2x32xf32>
    %cst_55 = arith.constant 1.000000e+00 : f32
    %134 = vector.broadcast %cst_55 : f32 to vector<2x32xf32>
    %135 = arith.subf %133, %134 : vector<2x32xf32>
    %136 = vector.extract_strided_slice %128 {offsets = [0, 96], sizes = [2, 32], strides = [1, 1]} : vector<2x128xf32> to vector<2x32xf32>
    %137 = arith.mulf %130, %111 : vector<2x32xf32>
    %138 = arith.mulf %129, %135 : vector<2x32xf32>
    %139 = arith.addf %137, %138 : vector<2x32xf32>
    %140 = math.tanh %139 : vector<2x32xf32>
    %141 = arith.mulf %136, %140 : vector<2x32xf32>
    %c0_56 = arith.constant 0 : index
    %c4_57 = arith.constant 4 : index
    %c0_58 = arith.constant 0 : index
    %142 = vector.load %arg6[%c0_56, %c4_57, %c0_58] : memref<2x7x32xf32, #tpu.memory_space<vmem>>, vector<2x1x32xf32>
    %143 = vector.shape_cast %142 : vector<2x1x32xf32> to vector<2x32xf32>
    %144 = vector.shape_cast %141 : vector<2x32xf32> to vector<2x1x32xf32>
    tpu.vector_store %arg6[%c0_56, %c4_57, %c0_58], %144 {strides = array<i32>} : memref<2x7x32xf32, #tpu.memory_space<vmem>>, vector<2x1x32xf32>,
    %c5 = arith.constant 5 : index
    %c0_59 = arith.constant 0 : index
    %c0_60 = arith.constant 0 : index
    %145 = vector.load %arg0[%c5, %c0_59, %c0_60] : memref<7x2x32xf32, #tpu.memory_space<vmem>>, vector<1x2x32xf32>
    %146 = vector.shape_cast %145 : vector<1x2x32xf32> to vector<2x32xf32>
    %cst_61 = arith.constant dense<0.000000e+00> : vector<2x128xf32>
    %147 = tpu.matmul %146, %0, %cst_61 {dimension_numbers = #tpu.dot_dimension_numbers<[1], [0], [0], [1], [0, 0, 1, 1], [], []>} : vector<2x32xf32>, vector<32x128xf32>, vector<2x128xf32> -> vector<2x128xf32>
    %148 = vector.broadcast %2 : vector<1x128xf32> to vector<2x128xf32>
    %149 = arith.addf %147, %148 : vector<2x128xf32>
    %cst_62 = arith.constant dense<0.000000e+00> : vector<2x128xf32>
    %150 = tpu.matmul %141, %1, %cst_62 {dimension_numbers = #tpu.dot_dimension_numbers<[1], [0], [0], [1], [0, 0, 1, 1], [], []>} : vector<2x32xf32>, vector<32x128xf32>, vector<2x128xf32> -> vector<2x128xf32>
    %151 = arith.addf %149, %150 : vector<2x128xf32>
    %152 = arith.negf %151 : vector<2x128xf32>
    %153 = math.exp %152 : vector<2x128xf32>
    %cst_63 = arith.constant 1.000000e+00 : f32
    %154 = vector.broadcast %cst_63 : f32 to vector<2x128xf32>
    %155 = arith.addf %154, %153 : vector<2x128xf32>
    %156 = arith.divf %154, %155 : vector<2x128xf32>
    %157 = vector.extract_strided_slice %156 {offsets = [0, 0], sizes = [2, 32], strides = [1, 1]} : vector<2x128xf32> to vector<2x32xf32>
    %158 = vector.extract_strided_slice %156 {offsets = [0, 32], sizes = [2, 32], strides = [1, 1]} : vector<2x128xf32> to vector<2x32xf32>
    %159 = vector.extract_strided_slice %156 {offsets = [0, 64], sizes = [2, 32], strides = [1, 1]} : vector<2x128xf32> to vector<2x32xf32>
    %cst_64 = arith.constant 2.000000e+00 : f32
    %160 = vector.broadcast %cst_64 : f32 to vector<2x32xf32>
    %161 = arith.mulf %160, %159 : vector<2x32xf32>
    %cst_65 = arith.constant 1.000000e+00 : f32
    %162 = vector.broadcast %cst_65 : f32 to vector<2x32xf32>
    %163 = arith.subf %161, %162 : vector<2x32xf32>
    %164 = vector.extract_strided_slice %156 {offsets = [0, 96], sizes = [2, 32], strides = [1, 1]} : vector<2x128xf32> to vector<2x32xf32>
    %165 = arith.mulf %158, %139 : vector<2x32xf32>
    %166 = arith.mulf %157, %163 : vector<2x32xf32>
    %167 = arith.addf %165, %166 : vector<2x32xf32>
    %168 = math.tanh %167 : vector<2x32xf32>
    %169 = arith.mulf %164, %168 : vector<2x32xf32>
    %c0_66 = arith.constant 0 : index
    %c5_67 = arith.constant 5 : index
    %c0_68 = arith.constant 0 : index
    %170 = vector.load %arg6[%c0_66, %c5_67, %c0_68] : memref<2x7x32xf32, #tpu.memory_space<vmem>>, vector<2x1x32xf32>
    %171 = vector.shape_cast %170 : vector<2x1x32xf32> to vector<2x32xf32>
    %172 = vector.shape_cast %169 : vector<2x32xf32> to vector<2x1x32xf32>
    tpu.vector_store %arg6[%c0_66, %c5_67, %c0_68], %172 {strides = array<i32>} : memref<2x7x32xf32, #tpu.memory_space<vmem>>, vector<2x1x32xf32>,
    %c6 = arith.constant 6 : index
    %c0_69 = arith.constant 0 : index
    %c0_70 = arith.constant 0 : index
    %173 = vector.load %arg0[%c6, %c0_69, %c0_70] : memref<7x2x32xf32, #tpu.memory_space<vmem>>, vector<1x2x32xf32>
    %174 = vector.shape_cast %173 : vector<1x2x32xf32> to vector<2x32xf32>
    %cst_71 = arith.constant dense<0.000000e+00> : vector<2x128xf32>
    %175 = tpu.matmul %174, %0, %cst_71 {dimension_numbers = #tpu.dot_dimension_numbers<[1], [0], [0], [1], [0, 0, 1, 1], [], []>} : vector<2x32xf32>, vector<32x128xf32>, vector<2x128xf32> -> vector<2x128xf32>
    %176 = vector.broadcast %2 : vector<1x128xf32> to vector<2x128xf32>
    %177 = arith.addf %175, %176 : vector<2x128xf32>
    %cst_72 = arith.constant dense<0.000000e+00> : vector<2x128xf32>
    %178 = tpu.matmul %169, %1, %cst_72 {dimension_numbers = #tpu.dot_dimension_numbers<[1], [0], [0], [1], [0, 0, 1, 1], [], []>} : vector<2x32xf32>, vector<32x128xf32>, vector<2x128xf32> -> vector<2x128xf32>
    %179 = arith.addf %177, %178 : vector<2x128xf32>
    %180 = arith.negf %179 : vector<2x128xf32>
    %181 = math.exp %180 : vector<2x128xf32>
    %cst_73 = arith.constant 1.000000e+00 : f32
    %182 = vector.broadcast %cst_73 : f32 to vector<2x128xf32>
    %183 = arith.addf %182, %181 : vector<2x128xf32>
    %184 = arith.divf %182, %183 : vector<2x128xf32>
    %185 = vector.extract_strided_slice %184 {offsets = [0, 0], sizes = [2, 32], strides = [1, 1]} : vector<2x128xf32> to vector<2x32xf32>
    %186 = vector.extract_strided_slice %184 {offsets = [0, 32], sizes = [2, 32], strides = [1, 1]} : vector<2x128xf32> to vector<2x32xf32>
    %187 = vector.extract_strided_slice %184 {offsets = [0, 64], sizes = [2, 32], strides = [1, 1]} : vector<2x128xf32> to vector<2x32xf32>
    %cst_74 = arith.constant 2.000000e+00 : f32
    %188 = vector.broadcast %cst_74 : f32 to vector<2x32xf32>
    %189 = arith.mulf %188, %187 : vector<2x32xf32>
    %cst_75 = arith.constant 1.000000e+00 : f32
    %190 = vector.broadcast %cst_75 : f32 to vector<2x32xf32>
    %191 = arith.subf %189, %190 : vector<2x32xf32>
    %192 = vector.extract_strided_slice %184 {offsets = [0, 96], sizes = [2, 32], strides = [1, 1]} : vector<2x128xf32> to vector<2x32xf32>
    %193 = arith.mulf %186, %167 : vector<2x32xf32>
    %194 = arith.mulf %185, %191 : vector<2x32xf32>
    %195 = arith.addf %193, %194 : vector<2x32xf32>
    %196 = math.tanh %195 : vector<2x32xf32>
    %197 = arith.mulf %192, %196 : vector<2x32xf32>
    %c0_76 = arith.constant 0 : index
    %c6_77 = arith.constant 6 : index
    %c0_78 = arith.constant 0 : index
    %198 = vector.load %arg6[%c0_76, %c6_77, %c0_78] : memref<2x7x32xf32, #tpu.memory_space<vmem>>, vector<2x1x32xf32>
    %199 = vector.shape_cast %198 : vector<2x1x32xf32> to vector<2x32xf32>
    %200 = vector.shape_cast %197 : vector<2x32xf32> to vector<2x1x32xf32>
    tpu.vector_store %arg6[%c0_76, %c6_77, %c0_78], %200 {strides = array<i32>} : memref<2x7x32xf32, #tpu.memory_space<vmem>>, vector<2x1x32xf32>,
    %c0_79 = arith.constant 0 : index
    %c0_80 = arith.constant 0 : index
    %201 = vector.load %arg7[%c0_79, %c0_80] : memref<2x32xf32, #tpu.memory_space<vmem>>, vector<2x32xf32>
    tpu.vector_store %arg7[%c0_79, %c0_80], %197 {strides = array<i32>} : memref<2x32xf32, #tpu.memory_space<vmem>>, vector<2x32xf32>,
    %c0_81 = arith.constant 0 : index
    %c0_82 = arith.constant 0 : index
    %202 = vector.load %arg8[%c0_81, %c0_82] : memref<2x32xf32, #tpu.memory_space<vmem>>, vector<2x32xf32>
    tpu.vector_store %arg8[%c0_81, %c0_82], %195 {strides = array<i32>} : memref<2x32xf32, #tpu.memory_space<vmem>>, vector<2x32xf32>,
    return
  }
}

</mosaic_0001>

<bundles_post_ra>
// kernel: tpu_custom_call.1
= control target key start
LH: loop header
LB: loop body
LE: loop exit
PB: predicated region body
PF: predicated region fallthrough
CT: control target
= control target key end

     0   :  { %14 = vsyncpa [#allocation3], 0  ;;  %s1447_s0 = inlined_call_operand.hbm [shape: f32[7,2,32], index: 0, kind: input, shape index: {}]   ;;  %s1448_s1 = inlined_call_operand.hbm [shape: f32[2,32], index: 1, kind: input, shape index: {}]   ;;  %s1449_s2 = inlined_call_operand.hbm [shape: f32[2,32], index: 2, kind: input, shape index: {}]   ;;  %s1450_s3 = inlined_call_operand.hbm [shape: f32[32,128], index: 3, kind: input, shape index: {}]   ;;  %s1451_s4 = inlined_call_operand.hbm [shape: f32[32,128], index: 4, kind: input, shape index: {}]   ;;  %s1452_s5 = inlined_call_operand.vmem [shape: f32[1,128], index: 5, kind: input, shape index: {}]   ;;  %s1453_s6 = inlined_call_operand.vmem [shape: f32[2,7,32], index: 6, kind: output, shape index: {0}]   ;;  %s1454_s7 = inlined_call_operand.hbm [shape: f32[2,32], index: 7, kind: output, shape index: {1}]   ;;  %s1455_s8 = inlined_call_operand.hbm [shape: f32[2,32], index: 8, kind: output, shape index: {2}]  }
   0x1   :  { %15 = vsyncpa [#allocation6], 0 }
   0x2   :  { %16 = vsyncpa [#allocation9], 0 }
   0x3   :  { %17 = vsyncpa [#allocation4], 0  ;;  %s37_s29 = sshll.u32 %s1448_s1, 4  ;;  %s38_s29 = int_to_ptr.hbm [resolvable:$true] %s37_s29 }
   0x4   :  { %18 = vsyncpa [#allocation13], 0  ;;  %s1131_s30 = smov [#allocation5]   ;;  %s58_s12 = sshll.u32 %s1450_s3, 4  ;;  %s59_s12 = int_to_ptr.hbm [resolvable:$true] %s58_s12 }
   0x5   :  { %s39_s9 = sshll.u32 %s1131_s30, 4  ;;  %s1132_s13 = smov [#allocation8]   ;;  %s40_s9 = int_to_ptr.vmem [resolvable:$true] %s39_s9 }
   0x6   :  { %42 = dma.hbm_to_vmem [thread:$0]  %s38_s29, 32, %s40_s9, [#allocation6]  }
   0x7   :  { %s60_s14 = sshll.u32 %s1132_s13, 4  ;;  %s1133_s15 = smov 128   ;;  %s61_s14 = int_to_ptr.vmem [resolvable:$true] %s60_s14 }
   0x8   :  { %s1134_s16 = smov 8   ;;  %s23_s1 = sshll.u32 %s1447_s0, 4  ;;  %s24_s1 = int_to_ptr.hbm [resolvable:$true] %s23_s1 }
   0x9   :  { %66 = dma.hbm_to_vmem [thread:$0]  %s59_s12, 512, %s61_s14, [#allocation9], %s1133_s15, %s1133_s15, %s1134_s16  }
   0xa   :  { %s1135_s19 = smov [#allocation2]   ;;  %s48_s3 = sshll.u32 %s1449_s2, 4  ;;  %s49_s3 = int_to_ptr.hbm [resolvable:$true] %s48_s3 }
   0xb   :  { %s25_s20 = sshll.u32 %s1135_s19, 4  ;;  %s1136_s23 = smov 32   ;;  %s26_s20 = int_to_ptr.vmem [resolvable:$true] %s25_s20 }
   0xc   :  { %s1137_s24 = smov 2   ;;  %s1138_s25 = smov [#allocation7]  }
   0xd   :  { %31 = dma.hbm_to_vmem [thread:$0]  %s24_s1, 224, %s26_s20, [#allocation3], %s1136_s23, %s1136_s23, %s1137_s24  }
   0xe   :  { %s50_s26 = sshll.u32 %s1138_s25, 4  ;;  %s71_s0 = sshll.u32 %s1451_s4, 4  ;;  %s51_s26 = int_to_ptr.vmem [resolvable:$true] %s50_s26  ;;  %s72_s0 = int_to_ptr.hbm [resolvable:$true] %s71_s0 }
   0xf   :  { %53 = dma.hbm_to_vmem [thread:$0]  %s49_s3, 32, %s51_s26, [#allocation6]  }
  0x10   :  { %s1139_s29 = smov [#allocation10]  }
  0x11   :  { %s73_s30 = sshll.u32 %s1139_s29, 4  ;;  %s74_s30 = int_to_ptr.vmem [resolvable:$true] %s73_s30 }
  0x12   :  { %79 = dma.hbm_to_vmem [thread:$0]  %s72_s0, 512, %s74_s30, [#allocation9], %s1133_s15, %s1133_s15, %s1134_s16  }
  0x13   :  { %1121 = dma.done.wait [#allocation3], 224  }
  0x14   :  { %1122 = vsyncadd [#allocation3], 4294967072 }
  0x15   :  { %1123 = dma.done.wait [#allocation6], 64  }
  0x16   :  { %1124 = vsyncadd [#allocation6], 4294967232 }
  0x17   :  { %1125 = dma.done.wait [#allocation9], 1024  }
  0x18   :  { %1126 = vsyncadd [#allocation9], 4294966272  ;;  %v1206_v0 = vld [vmem:[#allocation8 + $0x18] sm:$0xff]  ;;  %v1208_v1 = vld [vmem:[#allocation8 + $0x10] sm:$0xff]  ;;  %vm117_vm0 = vcmask 261120   ;;  %s1141_s17 = smov 96  }
  0x19   :  { %v1210_v2 = vld [vmem:[#allocation10 + $0x18] sm:$0xff]  ;;  %133 = vmatpush.msra.mxu0 %v1206_v0  ;;  %v1214_v3 = vld [vmem:[#allocation10 + $0x10] sm:$0xff]  ;;  %v1216_v4 = vld [vmem:[#allocation8 + $0x8] sm:$0xff]  ;;  %237 = vmatpush.msra.mxu2 %v1206_v0  ;;  %s1142_s25 = smov [#allocation12]   ;;  %s850_s0 = sshll.u32 %s1455_s8, 4  ;;  %s851_s0 = int_to_ptr.hbm [resolvable:$true] %s850_s0 }
  0x1a   :  { %156 = vmatpush.msra.mxu1 %v1210_v2  ;;  %v1218_v5 = vld [vmem:[#allocation10 + $0x8] sm:$0xff]  ;;  %261 = vmatpush.msra.mxu3 %v1210_v2  ;;  %v1224_v6 = vld [vmem:[#allocation8] sm:$0xff]  ;;  %v111_v9 = vld [vmem:[#allocation5] sm:$0x3]  ;;  %s848_s26 = sshll.u32 %s1142_s25, 4  ;;  %s1143_s11 = smov [#allocation11]   ;;  %s849_s26 = int_to_ptr.vmem [resolvable:$true] %s848_s26 }
  0x1b   :  { %134 = vmatpush.msra.mxu0 %v1208_v1  ;;  %v1226_v7 = vld [vmem:[#allocation10] sm:$0xff]  ;;  %238 = vmatpush.msra.mxu2 %v1208_v1  ;;  %v113_v8 = vld [vmem:[#allocation2] sm:$0x3]  ;;  %v112_v30 = vld [vmem:[#allocation7] sm:$0x3]  ;;  %s839_s14 = sshll.u32 %s1454_s7, 4  ;;  %s840_s14 = int_to_ptr.hbm [resolvable:$true] %s839_s14 }
  0x1c   :  { %157 = vmatpush.msra.mxu1 %v1214_v3  ;;  %262 = vmatpush.msra.mxu3 %v1214_v3  ;;  %v1267_v10 = vld [vmem:[%s1452_s5] ss:$0 sm:$0xff]  ;;  %s1140_s5 = smov 64   ;;  %v221_v38 = vld [vmem:[#allocation2 + $0x2] sm:$0x3] }
  0x1d   :  { %135 = vmatpush.msra.mxu0 %v1216_v4  ;;  %239 = vmatpush.msra.mxu2 %v1216_v4 }
  0x1e   :  { %158 = vmatpush.msra.mxu1 %v1218_v5  ;;  %263 = vmatpush.msra.mxu3 %v1218_v5 }
  0x1f   :  { %136 = vmatpush.msra.mxu0 %v1224_v6  ;;  %240 = vmatpush.msra.mxu2 %v1224_v6 }
  0x20   :  { %159 = vmatpush.msra.mxu1 %v1226_v7  ;;  %869 = vmatmul.msk.f32.vlgmr.msra.gmra.mxu0 %vm117_vm0, %v113_v8 }
  0x21   :  { %870 = vmatmul.msk.f32.vlgmr.msra.gmra.mxu1 %vm117_vm0, %v111_v9  ;;  %264 = vmatpush.msra.mxu3 %v1226_v7 }
  0x22   :  { %337 = vmatpush.msrb.mxu0 %v1206_v0  ;;  %361 = vmatpush.msrb.mxu1 %v1210_v2 }
  0x23   :  { %437 = vmatpush.msrb.mxu2 %v1206_v0  ;;  %461 = vmatpush.msrb.mxu3 %v1210_v2 }
  0x24   :  { %338 = vmatpush.msrb.mxu0 %v1208_v1  ;;  %362 = vmatpush.msrb.mxu1 %v1214_v3 }
  0x25   :  { %438 = vmatpush.msrb.mxu2 %v1208_v1  ;;  %462 = vmatpush.msrb.mxu3 %v1214_v3 }
  0x26   :  { %339 = vmatpush.msrb.mxu0 %v1216_v4  ;;  %363 = vmatpush.msrb.mxu1 %v1218_v5 }
  0x27   :  { %439 = vmatpush.msrb.mxu2 %v1216_v4  ;;  %463 = vmatpush.msrb.mxu3 %v1218_v5 }
  0x28   :  { %340 = vmatpush.msrb.mxu0 %v1224_v6  ;;  %364 = vmatpush.msrb.mxu1 %v1226_v7 }
  0x29   :  { %440 = vmatpush.msrb.mxu2 %v1224_v6  ;;  %464 = vmatpush.msrb.mxu3 %v1226_v7 }
  0x2a   :  { %537 = vmatpush.msra.mxu0 %v1206_v0  ;;  %561 = vmatpush.msra.mxu1 %v1210_v2 }
  0x2b   :  { %873 = vmatmul.msk.f32.vlgmr.msra.gmra.mxu2 %vm117_vm0, %v221_v38 }
  0x2c   :  { %538 = vmatpush.msra.mxu0 %v1208_v1  ;;  %562 = vmatpush.msra.mxu1 %v1214_v3 }
  0x2d   :  { %637 = vmatpush.msra.mxu2 %v1206_v0 }
  0x2e   :  { %539 = vmatpush.msra.mxu0 %v1216_v4  ;;  %563 = vmatpush.msra.mxu1 %v1218_v5 }
  0x2f   :  { %638 = vmatpush.msra.mxu2 %v1208_v1 }
  0x30   :  { %540 = vmatpush.msra.mxu0 %v1224_v6  ;;  %564 = vmatpush.msra.mxu1 %v1226_v7 }
  0x31   :  { %639 = vmatpush.msra.mxu2 %v1216_v4 }
  0x33   :  { %640 = vmatpush.msra.mxu2 %v1224_v6 }
  0x9d   :  { %v138_v11 = vpop.f32.mrf.mxu0 }
  0x9e   :  { %v161_v12 = vpop.f32.mrf.mxu1  ;;  %v139_v13 = vadd.f32 %v1267_v10, %v138_v11 }
  0xa0   :  { %v164_v14 = vadd.f32 %v161_v12, %v139_v13  ;;  %v321_v12 = vld [vmem:[#allocation2 + $0x4] sm:$0x3] }
  0xa1   :  { %877 = vmatmul.msk.f32.vlgmr.msrb.gmra.mxu0 %vm117_vm0, %v321_v12 }
  0xa2   :  { %v871_v15 = vmul.f32 -1.442695, %v164_v14  ;;  %737 = vmatpush.msrb.mxu0 %v1206_v0 }
  0xa4   :  { %911 = vpow2.f32 %v871_v15  ;;  %738 = vmatpush.msrb.mxu0 %v1208_v1 }
  0xa6   :  { %739 = vmatpush.msrb.mxu0 %v1216_v4 }
  0xa8   :  { %740 = vmatpush.msrb.mxu0 %v1224_v6 }
  0xaa   :  { %v912_v16 = vpop.eup %911 }
  0xab   :  { %v168_v17 = vadd.f32 1.0, %v912_v16 }
  0xad   :  { %913 = vrcp.f32 %v168_v17  ;;  %v180_v21 = vand.u32 2147483648, %v168_v17  ;;  %v178_v23 = vand.u32 2147483647, %v168_v17  ;;  %vm174_vm2 = vweird.f32 %v168_v17 }
  0xae   :  { %v242_v42 = vpop.f32.mrf.mxu2 }
  0xaf   :  { %v181_v25 = vor.u32 1.1754944e-38, %v180_v21  ;;  %vm179_vm4 = vcmp.eq.f32.partialorder %v178_v23, 8.507059e+37  ;;  %v243_v43 = vadd.f32 %v1267_v10, %v242_v42 }
  0xb3   :  { %v914_v18 = vpop.eup %913 }
  0xb4   :  { %v170_v19 = vmul.f32 %v914_v18, %v168_v17  ;;  %vm175_vm1 = vweird.f32 %v914_v18 }
  0xb5   :  { %vm176_vm3 = vmor %vm174_vm2, %vm175_vm1 }
  0xb6   :  { %v171_v20 = vsub.f32 1.0, %v170_v19 }
  0xb8   :  { %v172_v22 = vmul.f32 %v914_v18, %v171_v20 }
  0xba   :  { %v173_v24 = vadd.f32 %v914_v18, %v172_v22 }
  0xbc   :  { %v177_v26 = vsel %vm176_vm3, %v914_v18, %v173_v24 }
  0xbd   :  { %v182_v27 = vsel %vm179_vm4, %v181_v25, %v177_v26 }
  0xbe   :  { %v184_v28 = vmul.f32 2.0, %v182_v27 }
  0xc0   :  { %v872_v29 = vadd.f32 -1.0, %v184_v28 }
  0xc2   :  { %192 = vrot.lane.b32.xlu0 %v872_v29, %s1140_s5 }
  0xca   :  { %187 = vrot.lane.b32.xlu0 %v112_v30, %s1136_s23 }
 0x11e   :  { %v342_v0 = vpop.f32.mrf.mxu0 }
 0x11f   :  { %v343_v1 = vadd.f32 %v1267_v10, %v342_v0 }
 0x134   :  { %v193_v31 = vpop.permute.xlu0 %192 }
 0x135   :  { %v195_v32 = vmul.f32 %v193_v31, %v182_v27 }
 0x137   :  { %197 = vrot.lane.b32.xlu1 %v195_v32, %s1136_s23 }
 0x13c   :  { %v188_v33 = vpop.permute.xlu0 %187 }
 0x13d   :  { %v190_v34 = vmul.f32 %v188_v33, %v182_v27  ;;  %v421_v33 = vld [vmem:[#allocation2 + $0x6] sm:$0x3] }
 0x13e   :  { %881 = vmatmul.msk.f32.vlgmr.msrb.gmra.mxu2 %vm117_vm0, %v421_v33 }
 0x1a9   :  { %v198_v35 = vpop.permute.xlu1 %197 }
 0x1aa   :  { %v200_v36 = vadd.f32 %v198_v35, %v190_v34 }
 0x1ac   :  { %915 = vtanh.f32 %v200_v36 }
 0x1b2   :  { %v916_v37 = vpop.eup %915 }
 0x1b3   :  { %203 = vrot.lane.b32.xlu1 %v916_v37, %s1140_s5 }
 0x1c1   :  { %v442_v37 = vpop.f32.mrf.mxu2 }
 0x1c2   :  { %v443_v38 = vadd.f32 %v1267_v10, %v442_v37 }
 0x225   :  { %v204_v39 = vpop.permute.xlu1 %203 }
 0x226   :  { %v1279_v40 = vmul.f32 %v204_v39, %v182_v27 }
 0x228   :  { %245 = vrot.lane.b32.xlu2 %v1279_v40, %s1136_s23 }
 0x282   :  { %v246_v41 = vpop.permute.xlu2 %245 }
 0x283   :  { %874 = vmatmul.msk.f32.vlgmr.msra.gmra.mxu3 %vm117_vm0, %v246_v41 }
 0x284   :  { %661 = vmatpush.msra.mxu3 %v1210_v2 }
 0x286   :  { %662 = vmatpush.msra.mxu3 %v1214_v3 }
 0x288   :  { %663 = vmatpush.msra.mxu3 %v1218_v5 }
 0x28a   :  { %664 = vmatpush.msra.mxu3 %v1226_v7 }
 0x306   :  { %v266_v44 = vpop.f32.mrf.mxu3 }
 0x307   :  { %v269_v45 = vadd.f32 %v266_v44, %v243_v43 }
 0x309   :  { %v875_v46 = vmul.f32 -1.442695, %v269_v45 }
 0x30b   :  { %917 = vpow2.f32 %v875_v46 }
 0x311   :  { %v918_v47 = vpop.eup %917 }
 0x312   :  { %v273_v48 = vadd.f32 1.0, %v918_v47 }
 0x314   :  { %919 = vrcp.f32 %v273_v48  ;;  %v285_v52 = vand.u32 2147483648, %v273_v48  ;;  %v283_v54 = vand.u32 2147483647, %v273_v48  ;;  %vm279_vm6 = vweird.f32 %v273_v48 }
 0x316   :  { %v286_v56 = vor.u32 1.1754944e-38, %v285_v52  ;;  %vm284_vm8 = vcmp.eq.f32.partialorder %v283_v54, 8.507059e+37 }
 0x31a   :  { %v920_v49 = vpop.eup %919 }
 0x31b   :  { %v275_v50 = vmul.f32 %v920_v49, %v273_v48  ;;  %vm280_vm5 = vweird.f32 %v920_v49 }
 0x31c   :  { %vm281_vm7 = vmor %vm279_vm6, %vm280_vm5 }
 0x31d   :  { %v276_v51 = vsub.f32 1.0, %v275_v50 }
 0x31f   :  { %v277_v53 = vmul.f32 %v920_v49, %v276_v51 }
 0x321   :  { %v278_v55 = vadd.f32 %v920_v49, %v277_v53 }
 0x323   :  { %v282_v57 = vsel %vm281_vm7, %v920_v49, %v278_v55 }
 0x324   :  { %v287_v58 = vsel %vm284_vm8, %v286_v56, %v282_v57 }
 0x325   :  { %v289_v59 = vmul.f32 2.0, %v287_v58  ;;  %v291_v63 = vmul.f32 %v287_v58, %v200_v36 }
 0x327   :  { %v876_v60 = vadd.f32 -1.0, %v289_v59 }
 0x329   :  { %293 = vrot.lane.b32.xlu2 %v876_v60, %s1140_s5 }
 0x383   :  { %v294_v61 = vpop.permute.xlu2 %293 }
 0x384   :  { %v296_v62 = vmul.f32 %v294_v61, %v287_v58 }
 0x386   :  { %298 = vrot.lane.b32.xlu0 %v296_v62, %s1136_s23 }
 0x3f8   :  { %v299_v8 = vpop.permute.xlu0 %298 }
 0x3f9   :  { %v301_v9 = vadd.f32 %v299_v8, %v291_v63  ;;  %v521_v63 = vld [vmem:[#allocation2 + $0x8] sm:$0x3] }
 0x3fa   :  { %885 = vmatmul.msk.f32.vlgmr.msra.gmra.mxu0 %vm117_vm0, %v521_v63 }
 0x3fb   :  { %921 = vtanh.f32 %v301_v9 }
 0x401   :  { %v922_v11 = vpop.eup %921 }
 0x402   :  { %304 = vrot.lane.b32.xlu1 %v922_v11, %s1140_s5 }
 0x474   :  { %v305_v13 = vpop.permute.xlu1 %304 }
 0x475   :  { %v1297_v14 = vmul.f32 %v305_v13, %v287_v58 }
 0x477   :  { %345 = vrot.lane.b32.xlu2 %v1297_v14, %s1136_s23  ;;  %v542_v12 = vpop.f32.mrf.mxu0 }
 0x478   :  { %v543_v13 = vadd.f32 %v1267_v10, %v542_v12 }
 0x4d1   :  { %v346_v15 = vpop.permute.xlu2 %345 }
 0x4d2   :  { %878 = vmatmul.msk.f32.vlgmr.msrb.gmra.mxu1 %vm117_vm0, %v346_v15 }
 0x4d3   :  { %761 = vmatpush.msrb.mxu1 %v1210_v2 }
 0x4d5   :  { %762 = vmatpush.msrb.mxu1 %v1214_v3 }
 0x4d7   :  { %763 = vmatpush.msrb.mxu1 %v1218_v5 }
 0x4d9   :  { %764 = vmatpush.msrb.mxu1 %v1226_v7 }
 0x54f   :  { %v366_v4 = vpop.f32.mrf.mxu1 }
 0x550   :  { %v369_v6 = vadd.f32 %v366_v4, %v343_v1 }
 0x552   :  { %v879_v16 = vmul.f32 -1.442695, %v369_v6 }
 0x554   :  { %923 = vpow2.f32 %v879_v16 }
 0x55a   :  { %v924_v17 = vpop.eup %923 }
 0x55b   :  { %v373_v18 = vadd.f32 1.0, %v924_v17 }
 0x55d   :  { %925 = vrcp.f32 %v373_v18  ;;  %v385_v2 = vand.u32 2147483648, %v373_v18  ;;  %v383_v3 = vand.u32 2147483647, %v373_v18  ;;  %vm379_vm10 = vweird.f32 %v373_v18 }
 0x55f   :  { %v386_v7 = vor.u32 1.1754944e-38, %v385_v2  ;;  %vm384_vm12 = vcmp.eq.f32.partialorder %v383_v3, 8.507059e+37 }
 0x563   :  { %v926_v19 = vpop.eup %925 }
 0x564   :  { %v375_v20 = vmul.f32 %v926_v19, %v373_v18  ;;  %vm380_vm9 = vweird.f32 %v926_v19 }
 0x565   :  { %vm381_vm11 = vmor %vm379_vm10, %vm380_vm9 }
 0x566   :  { %v376_v21 = vsub.f32 1.0, %v375_v20 }
 0x568   :  { %v377_v22 = vmul.f32 %v926_v19, %v376_v21 }
 0x56a   :  { %v378_v5 = vadd.f32 %v926_v19, %v377_v22 }
 0x56c   :  { %v382_v23 = vsel %vm381_vm11, %v926_v19, %v378_v5 }
 0x56d   :  { %v387_v24 = vsel %vm384_vm12, %v386_v7, %v382_v23 }
 0x56e   :  { %v389_v25 = vmul.f32 2.0, %v387_v24  ;;  %v391_v29 = vmul.f32 %v387_v24, %v301_v9 }
 0x570   :  { %v880_v26 = vadd.f32 -1.0, %v389_v25 }
 0x572   :  { %393 = vrot.lane.b32.xlu0 %v880_v26, %s1140_s5 }
 0x5e4   :  { %v394_v27 = vpop.permute.xlu0 %393 }
 0x5e5   :  { %v396_v28 = vmul.f32 %v394_v27, %v387_v24 }
 0x5e7   :  { %398 = vrot.lane.b32.xlu1 %v396_v28, %s1136_s23 }
 0x659   :  { %v399_v30 = vpop.permute.xlu1 %398 }
 0x65a   :  { %v401_v31 = vadd.f32 %v399_v30, %v391_v29  ;;  %v621_v30 = vld [vmem:[#allocation2 + $0xa] sm:$0x3] }
 0x65b   :  { %889 = vmatmul.msk.f32.vlgmr.msra.gmra.mxu2 %vm117_vm0, %v621_v30 }
 0x65c   :  { %927 = vtanh.f32 %v401_v31 }
 0x662   :  { %v928_v32 = vpop.eup %927 }
 0x663   :  { %404 = vrot.lane.b32.xlu2 %v928_v32, %s1140_s5 }
 0x6bd   :  { %v405_v34 = vpop.permute.xlu2 %404 }
 0x6be   :  { %v1311_v35 = vmul.f32 %v405_v34, %v387_v24 }
 0x6c0   :  { %445 = vrot.lane.b32.xlu0 %v1311_v35, %s1136_s23 }
 0x6de   :  { %v642_v34 = vpop.f32.mrf.mxu2 }
 0x732   :  { %v446_v36 = vpop.permute.xlu0 %445 }
 0x733   :  { %882 = vmatmul.msk.f32.vlgmr.msrb.gmra.mxu3 %vm117_vm0, %v446_v36  ;;  %v643_v36 = vadd.f32 %v1267_v10, %v642_v34 }
 0x7b6   :  { %v466_v39 = vpop.f32.mrf.mxu3 }
 0x7b7   :  { %v469_v41 = vadd.f32 %v466_v39, %v443_v38 }
 0x7b9   :  { %v883_v42 = vmul.f32 -1.442695, %v469_v41 }
 0x7bb   :  { %929 = vpow2.f32 %v883_v42 }
 0x7c1   :  { %v930_v43 = vpop.eup %929 }
 0x7c2   :  { %v473_v44 = vadd.f32 1.0, %v930_v43 }
 0x7c4   :  { %931 = vrcp.f32 %v473_v44  ;;  %v485_v48 = vand.u32 2147483648, %v473_v44  ;;  %v483_v50 = vand.u32 2147483647, %v473_v44  ;;  %vm479_vm14 = vweird.f32 %v473_v44 }
 0x7c6   :  { %v486_v52 = vor.u32 1.1754944e-38, %v485_v48  ;;  %vm484_vm1 = vcmp.eq.f32.partialorder %v483_v50, 8.507059e+37 }
 0x7ca   :  { %v932_v45 = vpop.eup %931 }
 0x7cb   :  { %v475_v46 = vmul.f32 %v932_v45, %v473_v44  ;;  %vm480_vm13 = vweird.f32 %v932_v45 }
 0x7cc   :  { %vm481_vm15 = vmor %vm479_vm14, %vm480_vm13  ;;  %vm217_vm13 = vcmask 253952   ;;  %vm823_vm14 = vcmask 254976  }
 0x7cd   :  { %v476_v47 = vsub.f32 1.0, %v475_v46 }
 0x7cf   :  { %v477_v49 = vmul.f32 %v932_v45, %v476_v47 }
 0x7d1   :  { %v478_v51 = vadd.f32 %v932_v45, %v477_v49 }
 0x7d3   :  { %v482_v53 = vsel %vm481_vm15, %v932_v45, %v478_v51 }
 0x7d4   :  { %v487_v54 = vsel %vm484_vm1, %v486_v52, %v482_v53 }
 0x7d5   :  { %v489_v55 = vmul.f32 2.0, %v487_v54  ;;  %v491_v59 = vmul.f32 %v487_v54, %v401_v31 }
 0x7d7   :  { %v884_v56 = vadd.f32 -1.0, %v489_v55 }
 0x7d9   :  { %493 = vrot.lane.b32.xlu1 %v884_v56, %s1140_s5 }
 0x84b   :  { %v494_v57 = vpop.permute.xlu1 %493 }
 0x84c   :  { %v496_v58 = vmul.f32 %v494_v57, %v487_v54 }
 0x84e   :  { %498 = vrot.lane.b32.xlu2 %v496_v58, %s1136_s23 }
 0x8a8   :  { %v499_v60 = vpop.permute.xlu2 %498 }
 0x8a9   :  { %v501_v61 = vadd.f32 %v499_v60, %v491_v59 }
 0x8ab   :  { %933 = vtanh.f32 %v501_v61 }
 0x8b1   :  { %v934_v62 = vpop.eup %933 }
 0x8b2   :  { %504 = vrot.lane.b32.xlu0 %v934_v62, %s1140_s5 }
 0x924   :  { %v505_v8 = vpop.permute.xlu0 %504 }
 0x925   :  { %v1321_v9 = vmul.f32 %v505_v8, %v487_v54 }
 0x927   :  { %545 = vrot.lane.b32.xlu1 %v1321_v9, %s1136_s23 }
 0x999   :  { %v546_v11 = vpop.permute.xlu1 %545 }
 0x99a   :  { %886 = vmatmul.msk.f32.vlgmr.msra.gmra.mxu1 %vm117_vm0, %v546_v11 }
 0xa17   :  { %v566_v15 = vpop.f32.mrf.mxu1 }
 0xa18   :  { %v569_v0 = vadd.f32 %v566_v15, %v543_v13 }
 0xa1a   :  { %v887_v1 = vmul.f32 -1.442695, %v569_v0 }
 0xa1c   :  { %935 = vpow2.f32 %v887_v1 }
 0xa22   :  { %v936_v4 = vpop.eup %935 }
 0xa23   :  { %v573_v6 = vadd.f32 1.0, %v936_v4 }
 0xa25   :  { %937 = vrcp.f32 %v573_v6  ;;  %v585_v19 = vand.u32 2147483648, %v573_v6  ;;  %v583_v21 = vand.u32 2147483647, %v573_v6  ;;  %vm579_vm3 = vweird.f32 %v573_v6 }
 0xa27   :  { %v586_v22 = vor.u32 1.1754944e-38, %v585_v19  ;;  %vm584_vm5 = vcmp.eq.f32.partialorder %v583_v21, 8.507059e+37 }
 0xa2b   :  { %v938_v16 = vpop.eup %937 }
 0xa2c   :  { %v575_v17 = vmul.f32 %v938_v16, %v573_v6  ;;  %vm580_vm2 = vweird.f32 %v938_v16 }
 0xa2d   :  { %vm581_vm4 = vmor %vm579_vm3, %vm580_vm2 }
 0xa2e   :  { %v576_v18 = vsub.f32 1.0, %v575_v17 }
 0xa30   :  { %v577_v20 = vmul.f32 %v938_v16, %v576_v18 }
 0xa32   :  { %v578_v2 = vadd.f32 %v938_v16, %v577_v20 }
 0xa34   :  { %v582_v3 = vsel %vm581_vm4, %v938_v16, %v578_v2 }
 0xa35   :  { %v587_v5 = vsel %vm584_vm5, %v586_v22, %v582_v3 }
 0xa36   :  { %v589_v7 = vmul.f32 2.0, %v587_v5  ;;  %v591_v26 = vmul.f32 %v587_v5, %v501_v61  ;;  %v721_v61 = vld [vmem:[#allocation2 + $0xc] sm:$0x3] }
 0xa37   :  { %893 = vmatmul.msk.f32.vlgmr.msrb.gmra.mxu0 %vm117_vm0, %v721_v61 }
 0xa38   :  { %v888_v23 = vadd.f32 -1.0, %v589_v7  ;;  %v209_v7 = vperm.slane %v1279_v40, 0 }
 0xa3a   :  { %593 = vrot.lane.b32.xlu2 %v888_v23, %s1140_s5  ;;  %v410_v23 = vperm.slane %v1311_v35, 0 }
 0xa94   :  { %v594_v24 = vpop.permute.xlu2 %593 }
 0xa95   :  { %v596_v25 = vmul.f32 %v594_v24, %v587_v5  ;;  %v509_v24 = vrot.slane %v1321_v9, 1 }
 0xa97   :  { %598 = vrot.lane.b32.xlu0 %v596_v25, %s1136_s23  ;;  %v511_v25 = vperm.slane %v509_v24, 0 }
 0xab4   :  { %v742_v11 = vpop.f32.mrf.mxu0 }
 0xab5   :  { %v743_v12 = vadd.f32 %v1267_v10, %v742_v11 }
 0xb09   :  { %v599_v27 = vpop.permute.xlu0 %598 }
 0xb0a   :  { %v601_v28 = vadd.f32 %v599_v27, %v591_v26 }
 0xb0c   :  { %939 = vtanh.f32 %v601_v28 }
 0xb12   :  { %v940_v29 = vpop.eup %939 }
 0xb13   :  { %604 = vrot.lane.b32.xlu1 %v940_v29, %s1140_s5  ;;  %v208_v29 = vrot.slane %v1279_v40, 1 }
 0xb85   :  { %v605_v31 = vpop.permute.xlu1 %604 }
 0xb86   :  { %v1331_v32 = vmul.f32 %v605_v31, %v587_v5  ;;  %v210_v31 = vperm.slane %v208_v29, 0 }
 0xb88   :  { %645 = vrot.lane.b32.xlu2 %v1331_v32, %s1136_s23 }
 0xbe2   :  { %v646_v33 = vpop.permute.xlu2 %645 }
 0xbe3   :  { %890 = vmatmul.msk.f32.vlgmr.msra.gmra.mxu3 %vm117_vm0, %v646_v33 }
 0xc66   :  { %v666_v37 = vpop.f32.mrf.mxu3 }
 0xc67   :  { %v669_v38 = vadd.f32 %v666_v37, %v643_v36 }
 0xc69   :  { %v891_v39 = vmul.f32 -1.442695, %v669_v38 }
 0xc6b   :  { %941 = vpow2.f32 %v891_v39  ;;  %v409_v39 = vrot.slane %v1311_v35, 1  ;;  %v309_v35 = vrot.slane %v1297_v14, 1 }
 0xc71   :  { %v942_v41 = vpop.eup %941 }
 0xc72   :  { %v673_v42 = vadd.f32 1.0, %v942_v41 }
 0xc74   :  { %943 = vrcp.f32 %v673_v42  ;;  %v685_v46 = vand.u32 2147483648, %v673_v42  ;;  %v683_v48 = vand.u32 2147483647, %v673_v42  ;;  %vm679_vm7 = vweird.f32 %v673_v42 }
 0xc76   :  { %v686_v50 = vor.u32 1.1754944e-38, %v685_v46  ;;  %vm684_vm9 = vcmp.eq.f32.partialorder %v683_v48, 8.507059e+37 }
 0xc7a   :  { %v944_v43 = vpop.eup %943 }
 0xc7b   :  { %v675_v44 = vmul.f32 %v944_v43, %v673_v42  ;;  %vm680_vm6 = vweird.f32 %v944_v43 }
 0xc7c   :  { %vm681_vm8 = vmor %vm679_vm7, %vm680_vm6 }
 0xc7d   :  { %v676_v45 = vsub.f32 1.0, %v675_v44  ;;  %v310_v44 = vperm.slane %v1297_v14, 0 }
 0xc7f   :  { %v677_v47 = vmul.f32 %v944_v43, %v676_v45  ;;  %v610_v45 = vperm.slane %v1331_v32, 0 }
 0xc81   :  { %v678_v49 = vadd.f32 %v944_v43, %v677_v47  ;;  %v311_v47 = vperm.slane %v309_v35, 0 }
 0xc83   :  { %v682_v51 = vsel %vm681_vm8, %v944_v43, %v678_v49  ;;  %v411_v43 = vperm.slane %v409_v39, 0  ;;  %v510_v49 = vperm.slane %v1321_v9, 0 }
 0xc84   :  { %v687_v52 = vsel %vm684_vm9, %v686_v50, %v682_v51  ;;  %v609_v50 = vrot.slane %v1331_v32, 1 }
 0xc85   :  { %v689_v53 = vmul.f32 2.0, %v687_v52  ;;  %v691_v57 = vmul.f32 %v687_v52, %v601_v28 }
 0xc86   :  { %v611_v51 = vperm.slane %v609_v50, 0 }
 0xc87   :  { %v892_v54 = vadd.f32 -1.0, %v689_v53 }
 0xc89   :  { %693 = vrot.lane.b32.xlu0 %v892_v54, %s1140_s5 }
 0xcfb   :  { %v694_v55 = vpop.permute.xlu0 %693 }
 0xcfc   :  { %v696_v56 = vmul.f32 %v694_v55, %v687_v52 }
 0xcfe   :  { %698 = vrot.lane.b32.xlu1 %v696_v56, %s1136_s23 }
 0xd70   :  { %v699_v58 = vpop.permute.xlu1 %698 }
 0xd71   :  { %v701_v59 = vadd.f32 %v699_v58, %v691_v57 }
 0xd73   :  { %945 = vtanh.f32 %v701_v59 }
 0xd79   :  { %v946_v60 = vpop.eup %945 }
 0xd7a   :  { %704 = vrot.lane.b32.xlu2 %v946_v60, %s1140_s5 }
 0xdd4   :  { %v705_v62 = vpop.permute.xlu2 %704 }
 0xdd5   :  { %v1341_v63 = vmul.f32 %v705_v62, %v687_v52 }
 0xdd7   :  { %745 = vrot.lane.b32.xlu0 %v1341_v63, %s1136_s23  ;;  %v710_v26 = vperm.slane %v1341_v63, 0  ;;  %v709_v46 = vrot.slane %v1341_v63, 1 }
 0xdd9   :  { %v711_v48 = vperm.slane %v709_v46, 0 }
 0xe49   :  { %v746_v8 = vpop.permute.xlu0 %745 }
 0xe4a   :  { %894 = vmatmul.msk.f32.vlgmr.msrb.gmra.mxu1 %vm117_vm0, %v746_v8 }
 0xec7   :  { %v766_v13 = vpop.f32.mrf.mxu1 }
 0xec8   :  { %v769_v15 = vadd.f32 %v766_v13, %v743_v12 }
 0xeca   :  { %v895_v0 = vmul.f32 -1.442695, %v769_v15 }
 0xecc   :  { %947 = vpow2.f32 %v895_v0 }
 0xed2   :  { %v948_v1 = vpop.eup %947 }
 0xed3   :  { %v773_v4 = vadd.f32 1.0, %v948_v1 }
 0xed5   :  { %949 = vrcp.f32 %v773_v4  ;;  %v785_v18 = vand.u32 2147483648, %v773_v4  ;;  %v783_v20 = vand.u32 2147483647, %v773_v4  ;;  %vm779_vm11 = vweird.f32 %v773_v4 }
 0xed7   :  { %v786_v2 = vor.u32 1.1754944e-38, %v785_v18  ;;  %vm784_vm12 = vcmp.eq.f32.partialorder %v783_v20, 8.507059e+37 }
 0xedb   :  { %v950_v6 = vpop.eup %949 }
 0xedc   :  { %v775_v16 = vmul.f32 %v950_v6, %v773_v4  ;;  %vm780_vm10 = vweird.f32 %v950_v6 }
 0xedd   :  { %vm781_vm0 = vmor %vm779_vm11, %vm780_vm10 }
 0xede   :  { %v776_v17 = vsub.f32 1.0, %v775_v16 }
 0xee0   :  { %v777_v19 = vmul.f32 %v950_v6, %v776_v17 }
 0xee2   :  { %v778_v21 = vadd.f32 %v950_v6, %v777_v19 }
 0xee4   :  { %v782_v22 = vsel %vm781_vm0, %v950_v6, %v778_v21 }
 0xee5   :  { %v1347_v10 = vsel %vm784_vm12, %v786_v2, %v782_v22 }
 0xee6   :  { %v789_v3 = vmul.f32 2.0, %v1347_v10  ;;  %v791_v36 = vmul.f32 %v1347_v10, %v701_v59 }
 0xee8   :  { %v896_v5 = vadd.f32 -1.0, %v789_v3 }
 0xeea   :  { %793 = vrot.lane.b32.xlu1 %v896_v5, %s1140_s5 }
 0xef2   :  { %211 = vrot.lane.b32.xlu1 %v209_v7, %s1136_s23 }
 0xefa   :  { %412 = vrot.lane.b32.xlu1 %v410_v23, %s1136_s23 }
 0xf02   :  { %514 = vrot.lane.b32.xlu1 %v511_v25, %s1136_s23 }
 0xf0a   :  { %712 = vrot.lane.b32.xlu1 %v710_v26, %s1136_s23 }
 0xf5c   :  { %v794_v27 = vpop.permute.xlu1 %793 }
 0xf5d   :  { %v796_v28 = vmul.f32 %v794_v27, %v1347_v10 }
 0xf5f   :  { %798 = vrot.lane.b32.xlu2 %v796_v28, %s1136_s23 }
 0xf64   :  { %v212_v30 = vpop.permute.xlu1 %211 }
 0xf65   :  { %218 = vst.msk [vmem:[%s1453_s6] sm:$0x1] %vm217_vm13, %v212_v30 }
 0xf67   :  { %213 = vrot.lane.b32.xlu2 %v210_v31, %s1136_s23 }
 0xf6c   :  { %v413_v33 = vpop.permute.xlu1 %412 }
 0xf6d   :  { %418 = vst.msk [vmem:[%s1453_s6 + $0x2] sm:$0x1] %vm217_vm13, %v413_v33 }
 0xf74   :  { %v515_v34 = vpop.permute.xlu1 %514 }
 0xf75   :  { %519 = vst.msk [vmem:[%s1453_s6 + $0xb] sm:$0x1] %vm217_vm13, %v515_v34 }
 0xf7c   :  { %v713_v40 = vpop.permute.xlu1 %712 }
 0xf7d   :  { %718 = vst.msk [vmem:[%s1453_s6 + $0x5] sm:$0x1] %vm217_vm13, %v713_v40 }
 0xfb9   :  { %v799_v37 = vpop.permute.xlu2 %798 }
 0xfba   :  { %v801_v38 = vadd.f32 %v799_v37, %v791_v36 }
 0xfbc   :  { %951 = vtanh.f32 %v801_v38  ;;  %826 = vrot.lane.b32.xlu2 %v801_v38, %s1141_s17 }
 0xfc1   :  { %v214_v41 = vpop.permute.xlu2 %213 }
 0xfc2   :  { %v952_v42 = vpop.eup %951  ;;  %219 = vst.msk [vmem:[%s1453_s6 + $0x8] sm:$0x1] %vm217_vm13, %v214_v41 }
 0xfc3   :  { %804 = vrot.lane.b32.xlu0 %v952_v42, %s1140_s5 }
 0xfc4   :  { %414 = vrot.lane.b32.xlu2 %v411_v43, %s1136_s23 }
 0xfcb   :  { %312 = vrot.lane.b32.xlu0 %v310_v44, %s1136_s23 }
 0xfcc   :  { %612 = vrot.lane.b32.xlu2 %v610_v45, %s1136_s23 }
 0xfd3   :  { %314 = vrot.lane.b32.xlu0 %v311_v47, %s1136_s23 }
 0xfd4   :  { %714 = vrot.lane.b32.xlu2 %v711_v48, %s1136_s23 }
 0xfdb   :  { %512 = vrot.lane.b32.xlu0 %v510_v49, %s1136_s23 }
 0xfe3   :  { %614 = vrot.lane.b32.xlu0 %v611_v51, %s1136_s23 }
0x1016   :  { %v827_v52 = vpop.permute.xlu2 %826 }
0x1017   :  { %829 = vst.msk [vmem:[#allocation12] sm:$0x3] %vm823_vm14, %v827_v52 }
0x1018   :  { %853 = dma.vmem_to_hbm [thread:$0]  %s849_s26, 32, %s851_s0, [#allocation13]  }
0x101e   :  { %v415_v14 = vpop.permute.xlu2 %414 }
0x101f   :  { %419 = vst.msk [vmem:[%s1453_s6 + $0xa] sm:$0x1] %vm217_vm13, %v415_v14 }
0x1026   :  { %v613_v53 = vpop.permute.xlu2 %612 }
0x1027   :  { %618 = vst.msk [vmem:[%s1453_s6 + $0x4] sm:$0x1] %vm217_vm13, %v613_v53 }
0x102e   :  { %v715_v9 = vpop.permute.xlu2 %714 }
0x102f   :  { %719 = vst.msk [vmem:[%s1453_s6 + $0xd] sm:$0x1] %vm217_vm13, %v715_v9 }
0x1035   :  { %v805_v32 = vpop.permute.xlu0 %804 }
0x1036   :  { %v807_v54 = vmul.f32 %v805_v32, %v1347_v10 }
0x1038   :  { %820 = vrot.lane.b32.xlu1 %v807_v54, %s1136_s23  ;;  %v810_v55 = vperm.slane %v807_v54, 0  ;;  %v809_v56 = vrot.slane %v807_v54, 1 }
0x103a   :  { %812 = vrot.lane.b32.xlu0 %v810_v55, %s1136_s23  ;;  %v811_v58 = vperm.slane %v809_v56, 0 }
0x103d   :  { %v313_v57 = vpop.permute.xlu0 %312 }
0x103e   :  { %318 = vst.msk [vmem:[%s1453_s6 + $0x1] sm:$0x1] %vm217_vm13, %v313_v57 }
0x1040   :  { %814 = vrot.lane.b32.xlu1 %v811_v58, %s1136_s23  ;;  %s837_s23 = sshll.u32 %s1143_s11, 4  ;;  %s838_s23 = int_to_ptr.vmem [resolvable:$true] %s837_s23 }
0x1045   :  { %v315_v59 = vpop.permute.xlu0 %314 }
0x1046   :  { %319 = vst.msk [vmem:[%s1453_s6 + $0x9] sm:$0x1] %vm217_vm13, %v315_v59 }
0x104d   :  { %v513_v60 = vpop.permute.xlu0 %512 }
0x104e   :  { %518 = vst.msk [vmem:[%s1453_s6 + $0x3] sm:$0x1] %vm217_vm13, %v513_v60 }
0x1055   :  { %v615_v61 = vpop.permute.xlu0 %614 }
0x1056   :  { %619 = vst.msk [vmem:[%s1453_s6 + $0xc] sm:$0x1] %vm217_vm13, %v615_v61 }
0x10aa   :  { %v821_v62 = vpop.permute.xlu1 %820 }
0x10ab   :  { %824 = vst.msk [vmem:[#allocation11] sm:$0x3] %vm823_vm14, %v821_v62 }
0x10ac   :  { %v813_v63 = vpop.permute.xlu0 %812  ;;  %842 = dma.vmem_to_hbm [thread:$0]  %s838_s23, 32, %s840_s14, [#allocation4]  }
0x10ad   :  { %818 = vst.msk [vmem:[%s1453_s6 + $0x6] sm:$0x1] %vm217_vm13, %v813_v63 }
0x10b2   :  { %v815_v8 = vpop.permute.xlu1 %814 }
0x10b3   :  { %819 = vst.msk [vmem:[%s1453_s6 + $0xe] sm:$0x1] %vm217_vm13, %v815_v8 }
0x10b4   :  { %1127 = dma.done.wait [#allocation4], 32  }
0x10b5   :  { %1128 = vsyncadd [#allocation4], 4294967264 }
0x10b6   :  { %1129 = dma.done.wait [#allocation13], 32  }
0x10b7   :  { %1130 = vsyncadd [#allocation13], 4294967264 }
0x10b8   :  { %864 = vsyncpa [#allocation3], 1 }
0x10b9   :  { %865 = vsyncpa [#allocation6], 1 }
0x10ba   :  { %866 = vsyncpa [#allocation9], 1 }
0x10bb   :  { %867 = vsyncpa [#allocation4], 1 }
0x10bc   :  { %868 = vsyncpa [#allocation13], 1 }

</bundles_post_ra>
